<compile_context>
chip_gen: v7x
topology: tpu7x:2x2x1
jax: 0.10.0
libtpu: 0.0.40
codegen_flags: <defaults>
</compile_context>

<pallas_src>
import functools

import jax
import jax.numpy as jnp
from jax.experimental import pallas as pl
from jax.experimental.pallas import tpu as pltpu


def _round_up(x, m):
    return ((x + m - 1) // m) * m


def _cdiv(a, b):
    return (a + b - 1) // b


def _mlp_kernel(x_ref, w1_ref, b1_ref, w2_ref, b2_ref, logits_ref, hidden_ref):
    # x:  (TM, D)
    # w1: (D, H)   b1: (1, H)
    # w2: (H, A)   b2: (1, A)
    x = x_ref[...]
    h = jnp.dot(x, w1_ref[...], preferred_element_type=jnp.float32) + b1_ref[...]
    h = jnp.maximum(h, 0.0)  # ReLU
    hidden_ref[...] = h.astype(hidden_ref.dtype)
    logits = (
        jnp.dot(h.astype(w2_ref.dtype), w2_ref[...],
                preferred_element_type=jnp.float32)
        + b2_ref[...]
    )
    logits_ref[...] = logits.astype(logits_ref.dtype)


def prepare_params(params, dtype=jnp.float32):
    """One-time weight layout prep (transpose + bias reshape + cast).

    Call once per parameter set, outside the per-forward hot path, so the
    kernel always sees pre-laid-out (D,H)/(H,A) weights and (1,*) biases.
    """
    H = params["fc1_w"].shape[0]
    A = params["fc2_w"].shape[0]
    return {
        "w1": params["fc1_w"].T.astype(dtype),            # (D, H)
        "b1": params["fc1_b"].reshape(1, H).astype(dtype),  # (1, H)
        "w2": params["fc2_w"].T.astype(dtype),             # (H, A)
        "b2": params["fc2_b"].reshape(1, A).astype(dtype),  # (1, A)
    }


def _choose_row_tile(n, row_tile):
    # Largest tile <= row_tile (multiple of 8) that still leaves >= 2 grid
    # steps when n allows it, so the "parallel" grid axis can be sharded
    # across both TensorCores on v7x. For very large n the grid naturally has
    # many steps at tm == row_tile, amortizing the per-step pipeline overhead.
    tm = min(row_tile, _round_up(max(_cdiv(n, 2), 1), 8))
    return max(tm, 8)


@functools.partial(jax.jit, static_argnames=("row_tile",))
def system_acts_predictor_forward(inputs, input_lengths, prepared, *, row_tile=4096):
    """Forward pass of SystemActsPredictor.

    inputs: (batch, seq, input_dim)
    input_lengths: unused by the forward (kept for API parity with the module)
    prepared: output of prepare_params(): w1 (D,H), b1 (1,H), w2 (H,A), b2 (1,A)
    Returns (systemacts_logits (B, S, A), out (B, S, H)).
    """
    del input_lengths  # not used in the PyTorch forward either
    B, S, D = inputs.shape
    H = prepared["w1"].shape[1]
    A = prepared["w2"].shape[1]
    N = B * S
    dtype = inputs.dtype

    tm = _choose_row_tile(N, row_tile)
    grid = (pl.cdiv(N, tm),)

    x = inputs.reshape(N, D)  # free reshape; no pad, ragged last block is masked

    itemsize = jnp.dtype(dtype).itemsize
    cost = pl.CostEstimate(
        flops=2 * N * D * H + 2 * N * H * A,
        transcendentals=0,
        bytes_accessed=(N * D + D * H + H + H * A + A + N * H + N * A) * itemsize,
    )

    # Note: when N % tm != 0, out-of-bounds rows of the last x block contain
    # undefined data; their hidden/logits writes are masked by Pallas, so
    # nothing downstream ever sees them.
    logits, hidden = pl.pallas_call(
        _mlp_kernel,
        out_shape=(
            jax.ShapeDtypeStruct((N, A), dtype),
            jax.ShapeDtypeStruct((N, H), dtype),
        ),
        grid=grid,
        in_specs=[
            pl.BlockSpec((tm, D), lambda i: (i, 0)),   # x: streamed per tile
            pl.BlockSpec((D, H), lambda i: (0, 0)),    # w1: VMEM-resident
            pl.BlockSpec((1, H), lambda i: (0, 0)),    # b1: VMEM-resident
            pl.BlockSpec((H, A), lambda i: (0, 0)),    # w2: VMEM-resident
            pl.BlockSpec((1, A), lambda i: (0, 0)),    # b2: VMEM-resident
        ],
        out_specs=(
            pl.BlockSpec((tm, A), lambda i: (i, 0)),   # logits (unpadded A)
            pl.BlockSpec((tm, H), lambda i: (i, 0)),   # hidden ("out")
        ),
        compiler_params=pltpu.CompilerParams(
            dimension_semantics=("parallel",),
        ),
        cost_estimate=cost,
    )(x, prepared["w1"], prepared["b1"], prepared["w2"], prepared["b2"])

    return logits.reshape(B, S, A), hidden.reshape(B, S, H)


def init_params(key, input_dim, num_dialog_acts, hidden_dim=128):
    """Deterministic synthetic init mimicking nn.Linear default (uniform +/- 1/sqrt(fan_in))."""
    k1, k2, k3, k4 = jax.random.split(key, 4)
    bound1 = 1.0 / jnp.sqrt(input_dim)
    bound2 = 1.0 / jnp.sqrt(hidden_dim)
    return {
        "fc1_w": jax.random.uniform(k1, (hidden_dim, input_dim), jnp.float32,
                                    -bound1, bound1),
        "fc1_b": jax.random.uniform(k2, (hidden_dim,), jnp.float32,
                                    -bound1, bound1),
        "fc2_w": jax.random.uniform(k3, (num_dialog_acts, hidden_dim), jnp.float32,
                                    -bound2, bound2),
        "fc2_b": jax.random.uniform(k4, (num_dialog_acts,), jnp.float32,
                                    -bound2, bound2),
    }


if __name__ == "__main__":
    # Small shapes consistent with the module: batch=2, seq=8, input_dim=32,
    # hidden_dim=128, num_dialog_acts=16.
    B, S, D, H, A = 2, 8, 32, 128, 16

    key = jax.random.PRNGKey(0)
    k_in, k_params = jax.random.split(key)

    inputs = jax.random.normal(k_in, (B, S, D), dtype=jnp.float32)
    input_lengths = jnp.full((B,), S, dtype=jnp.int32)
    params = init_params(k_params, D, A, H)

    # One-time weight layout prep (hoisted off the per-call hot path).
    prepared = jax.tree_util.tree_map(jnp.asarray, prepare_params(params))

    logits, hidden = system_acts_predictor_forward(inputs, input_lengths, prepared)
    jax.block_until_ready((logits, hidden))

    # Reference check against plain JAX.
    ref_h = jnp.maximum(inputs @ params["fc1_w"].T + params["fc1_b"], 0.0)
    ref_logits = ref_h @ params["fc2_w"].T + params["fc2_b"]
    assert logits.shape == (B, S, A) and hidden.shape == (B, S, H)
    assert jnp.allclose(hidden, ref_h, atol=1e-5, rtol=1e-5)
    assert jnp.allclose(logits, ref_logits, atol=1e-5, rtol=1e-5)

    print("KERNEL_OK")
</pallas_src>

<mosaic_0001>
module attributes {stable_mosaic.version = 11 : i64} {
  func.func @_mlp_kernel(%arg0: i32, %arg1: memref<8x32xf32, #tpu.memory_space<vmem>>, %arg2: memref<32x128xf32, #tpu.memory_space<vmem>>, %arg3: memref<1x128xf32, #tpu.memory_space<vmem>>, %arg4: memref<128x16xf32, #tpu.memory_space<vmem>>, %arg5: memref<1x16xf32, #tpu.memory_space<vmem>>, %arg6: memref<8x16xf32, #tpu.memory_space<vmem>>, %arg7: memref<8x128xf32, #tpu.memory_space<vmem>>) attributes {dimension_semantics = [#tpu.dimension_semantics<parallel>], iteration_bounds = array<i64: 2>, scalar_prefetch = 0 : i64, scratch_operands = 0 : i64, tpu.core_type = #tpu.core_type<tc>, window_params = [{transform_indices = @transform_0, window_bounds = array<i64: 8, 32>}, {pipeline_mode = #tpu.pipeline_mode<synchronous>, transform_indices = @transform_1, window_bounds = array<i64: 32, 128>}, {pipeline_mode = #tpu.pipeline_mode<synchronous>, transform_indices = @transform_2, window_bounds = array<i64: 1, 128>}, {pipeline_mode = #tpu.pipeline_mode<synchronous>, transform_indices = @transform_3, window_bounds = array<i64: 128, 16>}, {pipeline_mode = #tpu.pipeline_mode<synchronous>, transform_indices = @transform_4, window_bounds = array<i64: 1, 16>}, {transform_indices = @transform_5, window_bounds = array<i64: 8, 16>}, {transform_indices = @transform_6, window_bounds = array<i64: 8, 128>}]} {
    %c0 = arith.constant 0 : index
    %c0_0 = arith.constant 0 : index
    %0 = vector.load %arg1[%c0, %c0_0] : memref<8x32xf32, #tpu.memory_space<vmem>>, vector<8x32xf32>
    %c0_1 = arith.constant 0 : index
    %c0_2 = arith.constant 0 : index
    %1 = vector.load %arg2[%c0_1, %c0_2] : memref<32x128xf32, #tpu.memory_space<vmem>>, vector<32x128xf32>
    %cst = arith.constant dense<0.000000e+00> : vector<8x128xf32>
    %2 = tpu.matmul %0, %1, %cst {dimension_numbers = #tpu.dot_dimension_numbers<[1], [0], [0], [1], [0, 0, 1, 1], [], []>} : vector<8x32xf32>, vector<32x128xf32>, vector<8x128xf32> -> vector<8x128xf32>
    %c0_3 = arith.constant 0 : index
    %c0_4 = arith.constant 0 : index
    %3 = vector.load %arg3[%c0_3, %c0_4] : memref<1x128xf32, #tpu.memory_space<vmem>>, vector<1x128xf32>
    %4 = vector.broadcast %3 : vector<1x128xf32> to vector<8x128xf32>
    %5 = arith.addf %2, %4 : vector<8x128xf32>
    %cst_5 = arith.constant 0.000000e+00 : f32
    %6 = vector.broadcast %cst_5 : f32 to vector<8x128xf32>
    %7 = arith.maximumf %5, %6 : vector<8x128xf32>
    %c0_6 = arith.constant 0 : index
    %c0_7 = arith.constant 0 : index
    %8 = vector.load %arg7[%c0_6, %c0_7] : memref<8x128xf32, #tpu.memory_space<vmem>>, vector<8x128xf32>
    tpu.vector_store %arg7[%c0_6, %c0_7], %7 {strides = array<i32>} : memref<8x128xf32, #tpu.memory_space<vmem>>, vector<8x128xf32>,
    %c0_8 = arith.constant 0 : index
    %c0_9 = arith.constant 0 : index
    %9 = vector.load %arg4[%c0_8, %c0_9] : memref<128x16xf32, #tpu.memory_space<vmem>>, vector<128x16xf32>
    %cst_10 = arith.constant dense<0.000000e+00> : vector<8x16xf32>
    %10 = tpu.matmul %7, %9, %cst_10 {dimension_numbers = #tpu.dot_dimension_numbers<[1], [0], [0], [1], [0, 0, 1, 1], [], []>} : vector<8x128xf32>, vector<128x16xf32>, vector<8x16xf32> -> vector<8x16xf32>
    %c0_11 = arith.constant 0 : index
    %c0_12 = arith.constant 0 : index
    %11 = vector.load %arg5[%c0_11, %c0_12] : memref<1x16xf32, #tpu.memory_space<vmem>>, vector<1x16xf32>
    %12 = vector.broadcast %11 : vector<1x16xf32> to vector<8x16xf32>
    %13 = arith.addf %10, %12 : vector<8x16xf32>
    %c0_13 = arith.constant 0 : index
    %c0_14 = arith.constant 0 : index
    %14 = vector.load %arg6[%c0_13, %c0_14] : memref<8x16xf32, #tpu.memory_space<vmem>>, vector<8x16xf32>
    tpu.vector_store %arg6[%c0_13, %c0_14], %13 {strides = array<i32>} : memref<8x16xf32, #tpu.memory_space<vmem>>, vector<8x16xf32>,
    return
  }
  func.func @transform_0(%arg0: i32) -> (i32, i32) {
    %c0_i32 = arith.constant 0 : i32
    %c0_i32_0 = arith.constant 0 : i32
    return %arg0, %c0_i32 : i32, i32
  }
  func.func @transform_1(%arg0: i32) -> (i32, i32) {
    %c0_i32 = arith.constant 0 : i32
    %c0_i32_0 = arith.constant 0 : i32
    %c0_i32_1 = arith.constant 0 : i32
    return %c0_i32, %c0_i32_0 : i32, i32
  }
  func.func @transform_2(%arg0: i32) -> (i32, i32) {
    %c0_i32 = arith.constant 0 : i32
    %c0_i32_0 = arith.constant 0 : i32
    %c0_i32_1 = arith.constant 0 : i32
    return %c0_i32, %c0_i32_0 : i32, i32
  }
  func.func @transform_3(%arg0: i32) -> (i32, i32) {
    %c0_i32 = arith.constant 0 : i32
    %c0_i32_0 = arith.constant 0 : i32
    %c0_i32_1 = arith.constant 0 : i32
    return %c0_i32, %c0_i32_0 : i32, i32
  }
  func.func @transform_4(%arg0: i32) -> (i32, i32) {
    %c0_i32 = arith.constant 0 : i32
    %c0_i32_0 = arith.constant 0 : i32
    %c0_i32_1 = arith.constant 0 : i32
    return %c0_i32, %c0_i32_0 : i32, i32
  }
  func.func @transform_5(%arg0: i32) -> (i32, i32) {
    %c0_i32 = arith.constant 0 : i32
    %c0_i32_0 = arith.constant 0 : i32
    return %arg0, %c0_i32 : i32, i32
  }
  func.func @transform_6(%arg0: i32) -> (i32, i32) {
    %c0_i32 = arith.constant 0 : i32
    %c0_i32_0 = arith.constant 0 : i32
    return %arg0, %c0_i32 : i32, i32
  }
}

</mosaic_0001>

<bundles_post_ra>
// kernel: system_acts_predictor_forward.1
= control target key start
LH: loop header
LB: loop body
LE: loop exit
PB: predicated region body
PF: predicated region fallthrough
CT: control target
= control target key end

     0   :  { %12 = vsyncpa [#allocation3], 0  ;;  %s1062_s0 = inlined_call_operand.vmem [shape: f32[16,32], index: 0, kind: input, shape index: {}]   ;;  %s1063_s1 = inlined_call_operand.vmem [shape: f32[32,128], index: 1, kind: input, shape index: {}]   ;;  %s1064_s2 = inlined_call_operand.vmem [shape: f32[1,128], index: 2, kind: input, shape index: {}]   ;;  %s1065_s3 = inlined_call_operand.vmem [shape: f32[128,16], index: 3, kind: input, shape index: {}]   ;;  %s1066_s4 = inlined_call_operand.vmem [shape: f32[1,16], index: 4, kind: input, shape index: {}]   ;;  %s1067_s5 = inlined_call_operand.hbm [shape: f32[16,16], index: 5, kind: output, shape index: {0}]   ;;  %s1068_s6 = inlined_call_operand.hbm [shape: f32[16,128], index: 6, kind: output, shape index: {1}]  }
   0x1   :  { %14 = vsyncpa [#allocation3 + $0x1], 0 }
   0x2   :  { %15 = vsyncpa [#allocation5], 0 }
   0x3   :  { %17 = vsyncpa [#allocation5 + $0x1], 0  ;;  %s861_s21 = smov 0   ;;  %s863_s22 = smov 0  }
   0x4   :  { %s865_s23 = smov 0   ;;  %s867_s24 = smov 0  }
   0x5 LB: > { %s882_s25 = sadd.s32 4294967295, %s819_s24   ;;  %s564_s26 = sadd.s32 4294967294, %s819_s24   ;;  %s819_s24 = sphi %s867_s24, %s1074_s24   ;;  %s815_s23 = sphi %s865_s23, %s1073_s23   ;;  %s811_s22 = sphi %s863_s22, %s1072_s22   ;;  %s807_s21 = sphi %s861_s21, %s1071_s21  }
   0x6   : > { %s886_s27 = sadd.s32 1, %s819_s24   ;;  %s140_s28 = sadd.s32 1, %s815_s23 }
   0x7   : > { %s137_s29 = ssub.s32 %s819_s24, %s886_s27  ;;  %p150_p0 = scmp.ne.s32.totalorder %s815_s23, %s811_s22 }
   0x8   : > { %p138_p1 = scmp.eq.s32.totalorder %s137_s29, 0  ;;  %p151_p2 = scmp.eq.s32.totalorder %s882_s25, 1 }
   0x9   : > { %p156_p3 = scmp.ne.s32.totalorder %s811_s22, %s807_s21  ;;  %p157_p4 = scmp.eq.s32.totalorder %s564_s26, 1 }
   0xa   : > { %s897_s30 = scalar_select %p138_p1, %s815_s23, %s140_s28  }
   0xb   : > { %p899_p5 = por %p151_p2, %p150_p0  ;;  %p903_p6 = por %p157_p4, %p156_p3 }
   0xc   : > { %p567_p7 = scmp.ge.s32.totalorder %s819_s24, 1  ;;  %p220_p8 = scmp.lt.s32.totalorder %s819_s24, 3 }
   0xe   : > { %p221_p9 = pnand %p567_p7, %p220_p8 }
   0xf   : > { %v259_v0 = vld [vmem:[%s1063_s1] sm:$0xff] (!%p221_p9)  ;;  %v260_v1 = vld [vmem:[%s1063_s1 + $0x8] sm:$0xff] (!%p221_p9)  ;;  %v261_v2 = vld [vmem:[%s1063_s1 + $0x10] sm:$0xff] (!%p221_p9)  ;;  %v821_v3 = vmov (!%p221_p9), 0.0|0.0   ;;  %vm822_vm0 = vmmov (!%p221_p9), 0   ;;  %v823_v6 = vmov (!%p221_p9), 0.0  }
  0x10   : > { %224 = sbr.rel (%p221_p9) target bundleno = 472 (0x1d8), region = 40  ;;  %648 = vmatprep.subr.bf16.mxu0 (!%p221_p9), %v821_v3  ;;  %v649_v4 = vpack.c.bf16 (!%p221_p9), %v260_v1, %v259_v0  ;;  %v262_v5 = vld [vmem:[%s1063_s1 + $0x18] sm:$0xff] (!%p221_p9)  ;;  %610 = vmatprep.mubr.msk.f32.mxu0 (!%p221_p9), %vm822_vm0, %v823_v6  ;;  %p254_p10 = scmp.lt.s32.totalorder (!%p221_p9), %s882_s25, 1  ;;  %v346_v7 = vld [vmem:[%s1065_s3] sm:$0xff] (!%p221_p9)  ;;  %v347_v8 = vld [vmem:[%s1065_s3 + $0x8] sm:$0xff] (!%p221_p9)  ;;  %vm270_vm1 = vcmask (!%p221_p9), 261120  }
  0x11   : > { %654 = vmatprep.subr.bf16.mxu1 (!%p221_p9), %v821_v3  ;;  %v655_v9 = vpack.c.bf16 (!%p221_p9), %v347_v8, %v346_v7  ;;  %v348_v10 = vld [vmem:[%s1065_s3 + $0x10] sm:$0xff] (!%p221_p9)  ;;  %v349_v11 = vld [vmem:[%s1065_s3 + $0x18] sm:$0xff] (!%p221_p9)  ;;  %645 = vmatprep.mubr.msk.f32.mxu1 (!%p221_p9), %vm822_vm0, %v823_v6  ;;  %v652_v12 = vpack.c.bf16 (!%p221_p9), %v262_v5, %v261_v2  ;;  %v350_v14 = vld [vmem:[%s1065_s3 + $0x20] sm:$0xff] (!%p221_p9)  ;;  %s975_s9 = sand.u32 (!%p221_p9), 1, %s811_s22   ;;  %s576_s14 = sshll.u32 (!%p221_p9), %s882_s25, 7 }
  0x12   : > { %650 = vmatpush3.bf16.msra.mxu0 (!%p221_p9), %v649_v4  ;;  %v658_v13 = vpack.c.bf16 (!%p221_p9), %v349_v11, %v348_v10  ;;  %v351_v15 = vld [vmem:[%s1065_s3 + $0x28] sm:$0xff] (!%p221_p9)  ;;  %v352_v18 = vld [vmem:[%s1065_s3 + $0x30] sm:$0xff] (!%p221_p9)  ;;  %v353_v19 = vld [vmem:[%s1065_s3 + $0x38] sm:$0xff] (!%p221_p9)  ;;  %s568_s12 = sshll.u32 (!%p221_p9), %s975_s9, 3  ;;  %s989_s17 = scalar_lea.hbm (!%p221_p9), %s1068_s6, %s576_s14 }
  0x13   : > { %651 = vmatprep.subr.bf16.mxu0 (!%p221_p9), %v821_v3  ;;  %656 = vmatpush3.bf16.msra.mxu1 (!%p221_p9), %v655_v9  ;;  %v661_v17 = vpack.c.bf16 (!%p221_p9), %v351_v15, %v350_v14  ;;  %v664_v20 = vpack.c.bf16 (!%p221_p9), %v353_v19, %v352_v18  ;;  %v354_v21 = vld [vmem:[%s1065_s3 + $0x40] sm:$0xff] (!%p221_p9)  ;;  %v355_v22 = vld [vmem:[%s1065_s3 + $0x48] sm:$0xff] (!%p221_p9)  ;;  %v356_v24 = vld [vmem:[%s1065_s3 + $0x50] sm:$0xff] (!%p221_p9)  ;;  %s253_s13 = scalar_lea.vmem (!%p221_p9), [#allocation4], %s568_s12  ;;  %s447_s19 = scalar_lea.sflag (!%p221_p9), [#allocation5], %s975_s9 }
  0x14   : > { %657 = vmatprep.subr.bf16.mxu1 (!%p221_p9), %v821_v3  ;;  %v667_v23 = vpack.c.bf16 (!%p221_p9), %v355_v22, %v354_v21  ;;  %v357_v25 = vld [vmem:[%s1065_s3 + $0x58] sm:$0xff] (!%p221_p9)  ;;  %v358_v27 = vld [vmem:[%s1065_s3 + $0x60] sm:$0xff] (!%p221_p9)  ;;  %v359_v28 = vld [vmem:[%s1065_s3 + $0x68] sm:$0xff] (!%p221_p9)  ;;  %s824_s26 = smov (!%p221_p9), [#allocation4]  }
  0x15   : > { %v670_v26 = vpack.c.bf16 (!%p221_p9), %v357_v25, %v356_v24  ;;  %v673_v29 = vpack.c.bf16 (!%p221_p9), %v359_v28, %v358_v27  ;;  %v360_v30 = vld [vmem:[%s1065_s3 + $0x70] sm:$0xff] (!%p221_p9)  ;;  %v361_v31 = vld [vmem:[%s1065_s3 + $0x78] sm:$0xff] (!%p221_p9)  ;;  %v571_v33 = vld [vmem:[%s1064_s2] ss:$0 sm:$0xff] (!%p221_p9)  ;;  %s729_s28 = sshll.u32 (!%p221_p9), %s824_s26, 4  ;;  %s730_s28 = int_to_ptr.vmem [resolvable:$false] %s729_s28 }
  0x16   : > { %653 = vmatpush3.bf16.msra.mxu0 (!%p221_p9), %v652_v12  ;;  %v676_v32 = vpack.c.bf16 (!%p221_p9), %v361_v31, %v360_v30  ;;  %s731_s29 = scalar_lea.vmem (!%p221_p9), %s730_s28, 256 }
  0x17   : > { %s255_s10 = scalar_select %p254_p10, %s882_s25, 1  ;;  %659 = vmatpush3.bf16.msra.mxu1 %v658_v13 }
  0x18   : > { %660 = vmatprep.subr.bf16.mxu1 %v821_v3 }
  0x19   : > { %s570_s11 = sshll.u32 %s255_s10, 3 }
  0x1a   : > { %s257_s18 = scalar_lea.vmem %s1062_s0, %s570_s11 }
  0x1b   : > { %v258_v16 = vld [vmem:[%s257_s18] sm:$0xff]  ;;  %662 = vmatpush3.bf16.msra.mxu1 %v661_v17  ;;  %s473_s18 = sshll.u32 %s253_s13, 4  ;;  %s474_s18 = int_to_ptr.vmem [resolvable:$true] %s473_s18 }
  0x1c   : > { %611 = vmatmul.mubr.msk.f32.vlgmr.msra.gmra.mrb[0].mxu0 %vm270_vm1, %v258_v16  ;;  %663 = vmatprep.subr.bf16.mxu1 %v821_v3  ;;  %s725_s20 = scalar_lea.vmem %s474_s18, 128  ;;  %p732_p0 = scmp.lt.s32.totalorder %s474_s18, %s730_s28 }
  0x1d   : > { %p726_p11 = scmp.ne.s32.totalorder %s474_s18, %s725_s20  ;;  %p733_p1 = scmp.lt.s32.totalorder %s731_s29, %s725_s20 }
  0x1f   : > { %665 = vmatpush3.bf16.msra.mxu1 %v664_v20  ;;  %p727_p12 = pnand %p726_p11, %p899_p5  ;;  %p734_p2 = por %p733_p1, %p732_p0 }
  0x20   : > { %666 = vmatprep.subr.bf16.mxu1 %v821_v3 }
  0x21   : > { %p728_p13 = pneg %p727_p12 }
  0x23   : > { %668 = vmatpush3.bf16.msra.mxu1 %v667_v23  ;;  %p735_p3 = pnand %p734_p2, %p728_p13 }
  0x24   : > { %669 = vmatprep.subr.bf16.mxu1 %v821_v3 }
  0x27   : > { %671 = vmatpush3.bf16.msra.mxu1 %v670_v26 }
  0x28   : > { %672 = vmatprep.subr.bf16.mxu1 %v821_v3 }
  0x2b   : > { %674 = vmatpush3.bf16.msra.mxu1 %v673_v29 }
  0x2c   : > { %675 = vmatprep.subr.bf16.mxu1 %v821_v3 }
  0x2f   : > { %677 = vmatpush3.bf16.msra.mxu1 %v676_v32 }
  0xef   : > { %v340_v34 = vpop.f32.mrb[0].mxu0 }
  0xf0   : > { %v341_v35 = vadd.f32 %v571_v33, %v340_v34  ;;  %v612_v36 = vpop.f32.mrb[1].mxu0 }
  0xf2   : > { %v344_v37 = vmax.f32 %v341_v35, 0.0 }
  0xf4   : > { %345 = vst [vmem:[%s253_s13] sm:$0xff] %v344_v37  ;;  %646 = vmatmul.mubr.f32.vlgmr.msra.gmra.mrb[0].mxu1 %v344_v37 }
  0xf5   : > { %738 = shalt.err (!%p735_p3)
}
  0xf6   : > { %s739_s10 = scalar_lea.hbm %s989_s17, 128  ;;  %s743_s15 = scalar_lea.hbm %s1068_s6, 256 }
  0xf7   : > { %p740_p4 = scmp.ne.s32.totalorder %s989_s17, %s739_s10  ;;  %p744_p9 = scmp.lt.u32.totalorder %s989_s17, %s1068_s6 }
  0xf8   : > { %p745_p10 = scmp.lt.u32.totalorder %s743_s15, %s739_s10  ;;  %p747_p12 = scmp.lt.u32.totalorder %s739_s10, %s989_s17 }
  0xf9   : > { %p741_p7 = pnand %p740_p4, %p899_p5 }
  0xfa   : > { %p746_p11 = por %p745_p10, %p744_p9 }
  0xfb   : > { %p742_p8 = pneg %p741_p7 }
  0xfc   : > { %p748_p13 = por %p747_p12, %p746_p11 }
  0xfe   : > { %p749_p0 = pnand %p748_p13, %p742_p8 }
 0x100   : > { %752 = shalt.err (!%p749_p0)
}
 0x101   : > { %679 = dma.vmem_to_hbm [thread:$0]  (%p899_p5), %s474_s18, 128, %s989_s17, %s447_s19   ;;  %v573_v38 = vld [vmem:[%s1066_s4] ss:$0 sm:$0xff]  ;;  %vm439_vm2 = vcmask 130048  }
 0x102   : > { %s246_s29 = scalar_lea.vmem [#allocation2], %s568_s12  ;;  %s1019_s15 = scalar_lea.hbm %s1067_s5, %s576_s14 }
 0x103   : > { %s460_s11 = sshll.u32 %s246_s29, 4  ;;  %s442_s17 = scalar_lea.sflag [#allocation3], %s975_s9  ;;  %s1021_s11 = int_to_ptr.vmem [resolvable:$true] %s460_s11 }
 0x104   : > { %s753_s18 = scalar_lea.vmem %s1021_s11, 128  ;;  %s825_s12 = smov [#allocation2]  }
 0x105   : > { %p754_p1 = scmp.ne.s32.totalorder %s1021_s11, %s753_s18  ;;  %s757_s19 = sshll.u32 %s825_s12, 4  ;;  %s758_s19 = int_to_ptr.vmem [resolvable:$false] %s757_s19 }
 0x106   : > { %s759_s25 = scalar_lea.vmem %s758_s19, 256  ;;  %p760_p4 = scmp.lt.s32.totalorder %s1021_s11, %s758_s19 }
 0x107   : > { %p755_p2 = pnand %p754_p1, %p899_p5  ;;  %p761_p7 = scmp.lt.s32.totalorder %s759_s25, %s753_s18 }
 0x109   : > { %p756_p3 = pneg %p755_p2  ;;  %p762_p8 = por %p761_p7, %p760_p4 }
 0x10b   : > { %p763_p9 = pnand %p762_p8, %p756_p3 }
 0x1c7   : > { %v435_v39 = vpop.f32.mrb[0].mxu1 }
 0x1c8   : > { %v436_v40 = vadd.f32 %v573_v38, %v435_v39  ;;  %v647_v41 = vpop.f32.mrb[1].mxu1 }
 0x1ca   : > { %440 = vst.msk [vmem:[%s246_s29] sm:$0xff] %vm439_vm2, %v436_v40 }
 0x1cb   : > { %766 = shalt.err (!%p763_p9)
}
 0x1cc   : > { %s767_s9 = scalar_lea.hbm %s1019_s15, 128  ;;  %s771_s26 = scalar_lea.hbm %s1067_s5, 256 }
 0x1cd   : > { %p768_p10 = scmp.ne.s32.totalorder %s1019_s15, %s767_s9  ;;  %p772_p13 = scmp.lt.u32.totalorder %s1019_s15, %s1067_s5 }
 0x1ce   : > { %p773_p0 = scmp.lt.u32.totalorder %s771_s26, %s767_s9  ;;  %p775_p2 = scmp.lt.u32.totalorder %s767_s9, %s1019_s15 }
 0x1cf   : > { %p769_p11 = pnand %p768_p10, %p899_p5 }
 0x1d0   : > { %p774_p1 = por %p773_p0, %p772_p13 }
 0x1d1   : > { %p770_p12 = pneg %p769_p11 }
 0x1d2   : > { %p776_p3 = por %p775_p2, %p774_p1 }
 0x1d4   : > { %p777_p4 = pnand %p776_p3, %p770_p12 }
 0x1d6   : > { %780 = shalt.err (!%p777_p4)
}
 0x1d7   : > { %678 = dma.vmem_to_hbm [thread:$0]  (%p899_p5), %s1021_s11, 128, %s1019_s15, %s442_s17  }
 0x1d8 PF: > { %p689_p7 = scmp.ge.s32.totalorder %s819_s24, 2  ;;  %s485_s29 = sand.u32 1, %s807_s21  }
 0x1d9   : > { %s486_s10 = scalar_lea.sflag [#allocation3], %s485_s29 }
 0x1da   : > { %p683_p8 = pnand %p689_p7, %p903_p6 }
 0x1dc   : > { %798 = dma.done.wait (!%p683_p8), %s486_s10, 128  }
 0x1dd   : > { %800 = vsyncadd (!%p683_p8), %s486_s10, 4294967168  ;;  %s495_s13 = scalar_lea.sflag [#allocation5], %s485_s29 }
 0x1de   : > { %802 = dma.done.wait (!%p683_p8), %s495_s13, 128  }
 0x1df   : > { %804 = vsyncadd (!%p683_p8), %s495_s13, 4294967168  ;;  %p20_p5 = scmp.ge.s32.totalorder %s886_s27, 4   ;;  %s1071_s21 = smov %s811_s22 }
 0x1e0   : > { %s1072_s22 = smov %s815_s23  ;;  %s1073_s23 = smov %s897_s30 }
 0x1e1   : > { %s1074_s24 = smov %s886_s27  ;;  %22 = sbr.rel (!%p20_p5) target bundleno = 5 (0x5), region = 92 }
 0x1e8   :  { %500 = vsyncpa [#allocation3], 1 }
 0x1e9   :  { %502 = vsyncpa [#allocation3 + $0x1], 1 }
 0x1ea   :  { %503 = vsyncpa [#allocation5], 1 }
 0x1eb   :  { %505 = vsyncpa [#allocation5 + $0x1], 1 }

</bundles_post_ra>
